<compile_context>
chip_gen: v7x
topology: tpu7x:2x2x1
jax: 0.10.0
libtpu: 0.0.40
codegen_flags: <defaults>
</compile_context>

<pallas_src>
import functools

import jax
import jax.numpy as jnp
from jax.experimental import pallas as pl
from jax.experimental.pallas import tpu as pltpu

_LN_EPS = 1e-5  # PyTorch nn.LayerNorm default


def _round_up(x, m):
    return ((x + m - 1) // m) * m


def _thdlin_kernel(x_ref, w12_ref, b12_ref, w13_ref, b13_ref,
                   ln_g_ref, ln_b_ref, w14_ref, b14_ref, o_ref):
    x = x_ref[...]

    # fc11 folded into fc12 (wrapper precomputes W12f / b12f) -> ReLU.
    f2 = jnp.dot(x, w12_ref[...], preferred_element_type=jnp.float32)
    f2 = jnp.maximum(f2 + b12_ref[...], 0.0)

    # dp1: Dropout(0.3) -> identity in eval mode.

    # fc13 (+ fc13_b)
    f3 = jnp.dot(f2.astype(w13_ref.dtype), w13_ref[...],
                 preferred_element_type=jnp.float32)
    f3 = f3 + b13_ref[...]

    # LayerNorm over hid3 (biased variance, eps=1e-5), gamma/beta affine, f32.
    mean = jnp.mean(f3, axis=-1, keepdims=True)
    cent = f3 - mean
    var = jnp.mean(cent * cent, axis=-1, keepdims=True)
    bn = cent * jax.lax.rsqrt(var + _LN_EPS)          # rsqrt -> EUP slot
    bn = bn * ln_g_ref[...] + ln_b_ref[...]

    # dp2: Dropout(0.3) -> identity in eval mode.

    # fc14; output width zero-padded to a multiple of 128 lanes in the wrapper
    # -> unmasked lane-dense store.
    f4 = jnp.dot(bn.astype(w14_ref.dtype), w14_ref[...],
                 preferred_element_type=jnp.float32)
    o_ref[...] = (f4 + b14_ref[...]).astype(o_ref.dtype)


@functools.partial(jax.jit, static_argnames=("max_tile_b", "matmul_dtype"))
def thdlin_forward(x, params, *, max_tile_b=512, matmul_dtype=jnp.float32):
    """Eval-mode forward of THdLin.  x: (B, in_) f32.  Returns (B, out_) f32."""
    B, in_dim = x.shape
    out_dim = params["w14"].shape[1]
    hid2, hid3 = params["w12"].shape[1], params["w13"].shape[1]

    # ---- wrapper-side parameter folding (hoisted out of the grid loop) -----
    b11 = params["b11_lin"] + params["b11_extra"]
    # Fuse fc11 into fc12: no nonlinearity between them.
    w12f = params["w11"] @ params["w12"]                           # (in, hid2)
    b12f = (b11 @ params["w12"] + params["b12_lin"]
            + params["b12_extra"]).reshape(1, -1)
    w13 = params["w13"]
    b13 = (params["b13_lin"] + params["b13_extra"]).reshape(1, -1)
    ln_g = params["ln_g"].reshape(1, -1)
    ln_b = params["ln_b"].reshape(1, -1)

    # Zero-pad the output projection to a lane-dense width (multiple of 128).
    out_pad = _round_up(out_dim, 128)
    w14 = jnp.pad(params["w14"], ((0, 0), (0, out_pad - out_dim)))
    b14 = jnp.pad(params["b14_lin"], (0, out_pad - out_dim)).reshape(1, -1)

    # Matmul-operand dtype (bf16 on v6e/v7x); biases/LN params stay f32.
    md = jnp.dtype(matmul_dtype)
    x_mm = x.astype(md)
    w12f_mm = w12f.astype(md)
    w13_mm = w13.astype(md)
    w14_mm = w14.astype(md)

    # ---- batch tiling -------------------------------------------------------
    # Largest multiple-of-8 tile that still yields >= 2 grid steps (v7x
    # megacore).  No explicit pad of x; Pallas masks the boundary block.
    if B <= 16:
        tile_b = _round_up(max(B, 1), 8)
    else:
        tile_b = min(max_tile_b, _round_up(pl.cdiv(B, 2), 8))
    grid_b = pl.cdiv(B, tile_b)

    x_spec = pl.BlockSpec((tile_b, in_dim), lambda i: (i, 0))
    o_spec = pl.BlockSpec((tile_b, out_pad), lambda i: (i, 0))
    # Constant index_map -> weights/biases stay VMEM-resident across steps.
    resident = lambda a: pl.BlockSpec(a.shape, lambda i: (0,) * a.ndim)

    flops = 2 * B * (in_dim * hid2 + hid2 * hid3 + hid3 * out_pad)
    bytes_accessed = (
        x_mm.size * x_mm.dtype.itemsize
        + sum(a.size * a.dtype.itemsize
              for a in (w12f_mm, b12f, w13_mm, b13, ln_g, ln_b, w14_mm, b14))
        + B * out_pad * 4)
    cost = pl.CostEstimate(flops=flops, transcendentals=B,
                           bytes_accessed=bytes_accessed)

    out = pl.pallas_call(
        _thdlin_kernel,
        out_shape=jax.ShapeDtypeStruct((B, out_pad), jnp.float32),
        grid=(grid_b,),
        in_specs=[x_spec,
                  resident(w12f_mm), resident(b12f),
                  resident(w13_mm), resident(b13),
                  resident(ln_g), resident(ln_b),
                  resident(w14_mm), resident(b14)],
        out_specs=o_spec,
        compiler_params=pltpu.CompilerParams(
            dimension_semantics=("parallel",),      # megacore split on v7x
            vmem_limit_bytes=32 * 1024 * 1024),
        cost_estimate=cost,
    )(x_mm, w12f_mm, b12f, w13_mm, b13, ln_g, ln_b, w14_mm, b14)

    return out[:, :out_dim]


def init_params(key, in_dim, out_dim, hid=64, hid2=32, hid3=100):
    """PyTorch-style init; weights stored pre-transposed as (in, out)."""
    ks = jax.random.split(key, 12)

    def lin(kw, kb, fan_in, fan_out):
        bound = 1.0 / jnp.sqrt(fan_in)
        w = jax.random.uniform(kw, (fan_in, fan_out), jnp.float32, -bound, bound)
        b = jax.random.uniform(kb, (fan_out,), jnp.float32, -bound, bound)
        return w, b

    w11, b11 = lin(ks[0], ks[1], in_dim, hid)
    w12, b12 = lin(ks[2], ks[3], hid, hid2)
    w13, b13 = lin(ks[4], ks[5], hid2, hid3)
    w14, b14 = lin(ks[6], ks[7], hid3, out_dim)
    # Extra bias Parameters are zero-init in the module; use small random
    # values here so the test exercises the full data path.
    b11_x = 0.1 * jax.random.normal(ks[8], (hid,), jnp.float32)
    b12_x = 0.1 * jax.random.normal(ks[9], (hid2,), jnp.float32)
    b13_x = 0.1 * jax.random.normal(ks[10], (hid3,), jnp.float32)
    ln_g = 1.0 + 0.1 * jax.random.normal(ks[11], (hid3,), jnp.float32)
    ln_b = jnp.zeros((hid3,), jnp.float32)
    return {"w11": w11, "b11_lin": b11, "b11_extra": b11_x,
            "w12": w12, "b12_lin": b12, "b12_extra": b12_x,
            "w13": w13, "b13_lin": b13, "b13_extra": b13_x,
            "ln_g": ln_g, "ln_b": ln_b,
            "w14": w14, "b14_lin": b14}


def reference_forward(x, p):
    """Pure-JAX reference of THdLin.forward (eval mode, unfused)."""
    f1 = x @ p["w11"] + p["b11_lin"] + p["b11_extra"]
    f2 = jnp.maximum(f1 @ p["w12"] + p["b12_lin"] + p["b12_extra"], 0.0)
    f3 = f2 @ p["w13"] + p["b13_lin"] + p["b13_extra"]
    mean = jnp.mean(f3, axis=-1, keepdims=True)
    var = jnp.mean((f3 - mean) ** 2, axis=-1, keepdims=True)
    bn = (f3 - mean) / jnp.sqrt(var + _LN_EPS) * p["ln_g"] + p["ln_b"]
    return bn @ p["w14"] + p["b14_lin"]


if __name__ == "__main__":
    # Module defaults: hid=64, hid2=32, hid3=100.  batch=256 -> 2 batch tiles
    # of 128 (keeps grid_b = 2 so v7x megacore has work for both cores).
    batch, in_dim, out_dim = 256, 16, 8
    hid, hid2, hid3 = 64, 32, 100

    key = jax.random.PRNGKey(0)
    kx, kp = jax.random.split(key)
    x = jax.random.normal(kx, (batch, in_dim), jnp.float32)
    params = init_params(kp, in_dim, out_dim, hid, hid2, hid3)

    ref = reference_forward(x, params)

    # f32 path (default): matches the unfused reference to fp-reassociation.
    out = jax.block_until_ready(thdlin_forward(x, params))
    assert out.shape == (batch, out_dim)
    assert jnp.allclose(out, ref, atol=2e-4, rtol=2e-4), "f32 mismatch vs reference"

    # bf16 matmul-operand path (v6e/v7x MXU win); f32 accumulation + LayerNorm,
    # so only a loose tolerance vs the f32 reference is expected.
    out_bf16 = jax.block_until_ready(
        thdlin_forward(x, params, matmul_dtype=jnp.bfloat16))
    assert out_bf16.shape == (batch, out_dim)
    assert jnp.allclose(out_bf16, ref, atol=1e-1, rtol=1e-1), "bf16 mismatch vs reference"

    print("KERNEL_OK")
</pallas_src>

<mosaic_0001>
module attributes {stable_mosaic.version = 11 : i64} {
  func.func @_thdlin_kernel(%arg0: i32, %arg1: memref<128x16xf32, #tpu.memory_space<vmem>>, %arg2: memref<16x32xf32, #tpu.memory_space<vmem>>, %arg3: memref<1x32xf32, #tpu.memory_space<vmem>>, %arg4: memref<32x100xf32, #tpu.memory_space<vmem>>, %arg5: memref<1x100xf32, #tpu.memory_space<vmem>>, %arg6: memref<1x100xf32, #tpu.memory_space<vmem>>, %arg7: memref<1x100xf32, #tpu.memory_space<vmem>>, %arg8: memref<100x128xf32, #tpu.memory_space<vmem>>, %arg9: memref<1x128xf32, #tpu.memory_space<vmem>>, %arg10: memref<128x128xf32, #tpu.memory_space<vmem>>) attributes {dimension_semantics = [#tpu.dimension_semantics<parallel>], iteration_bounds = array<i64: 2>, scalar_prefetch = 0 : i64, scratch_operands = 0 : i64, tpu.core_type = #tpu.core_type<tc>, window_params = [{transform_indices = @transform_0, window_bounds = array<i64: 128, 16>}, {pipeline_mode = #tpu.pipeline_mode<synchronous>, transform_indices = @transform_1, window_bounds = array<i64: 16, 32>}, {pipeline_mode = #tpu.pipeline_mode<synchronous>, transform_indices = @transform_2, window_bounds = array<i64: 1, 32>}, {pipeline_mode = #tpu.pipeline_mode<synchronous>, transform_indices = @transform_3, window_bounds = array<i64: 32, 100>}, {pipeline_mode = #tpu.pipeline_mode<synchronous>, transform_indices = @transform_4, window_bounds = array<i64: 1, 100>}, {pipeline_mode = #tpu.pipeline_mode<synchronous>, transform_indices = @transform_5, window_bounds = array<i64: 1, 100>}, {pipeline_mode = #tpu.pipeline_mode<synchronous>, transform_indices = @transform_6, window_bounds = array<i64: 1, 100>}, {pipeline_mode = #tpu.pipeline_mode<synchronous>, transform_indices = @transform_7, window_bounds = array<i64: 100, 128>}, {pipeline_mode = #tpu.pipeline_mode<synchronous>, transform_indices = @transform_8, window_bounds = array<i64: 1, 128>}, {transform_indices = @transform_9, window_bounds = array<i64: 128, 128>}]} {
    %c0 = arith.constant 0 : index
    %c0_0 = arith.constant 0 : index
    %0 = vector.load %arg1[%c0, %c0_0] : memref<128x16xf32, #tpu.memory_space<vmem>>, vector<128x16xf32>
    %c0_1 = arith.constant 0 : index
    %c0_2 = arith.constant 0 : index
    %1 = vector.load %arg2[%c0_1, %c0_2] : memref<16x32xf32, #tpu.memory_space<vmem>>, vector<16x32xf32>
    %cst = arith.constant dense<0.000000e+00> : vector<128x32xf32>
    %2 = tpu.matmul %0, %1, %cst {dimension_numbers = #tpu.dot_dimension_numbers<[1], [0], [0], [1], [0, 0, 1, 1], [], []>} : vector<128x16xf32>, vector<16x32xf32>, vector<128x32xf32> -> vector<128x32xf32>
    %c0_3 = arith.constant 0 : index
    %c0_4 = arith.constant 0 : index
    %3 = vector.load %arg3[%c0_3, %c0_4] : memref<1x32xf32, #tpu.memory_space<vmem>>, vector<1x32xf32>
    %4 = vector.broadcast %3 : vector<1x32xf32> to vector<128x32xf32>
    %5 = arith.addf %2, %4 : vector<128x32xf32>
    %cst_5 = arith.constant 0.000000e+00 : f32
    %6 = vector.broadcast %cst_5 : f32 to vector<128x32xf32>
    %7 = arith.maximumf %5, %6 : vector<128x32xf32>
    %c0_6 = arith.constant 0 : index
    %c0_7 = arith.constant 0 : index
    %8 = vector.load %arg4[%c0_6, %c0_7] : memref<32x100xf32, #tpu.memory_space<vmem>>, vector<32x100xf32>
    %cst_8 = arith.constant dense<0.000000e+00> : vector<128x100xf32>
    %9 = tpu.matmul %7, %8, %cst_8 {dimension_numbers = #tpu.dot_dimension_numbers<[1], [0], [0], [1], [0, 0, 1, 1], [], []>} : vector<128x32xf32>, vector<32x100xf32>, vector<128x100xf32> -> vector<128x100xf32>
    %c0_9 = arith.constant 0 : index
    %c0_10 = arith.constant 0 : index
    %10 = vector.load %arg5[%c0_9, %c0_10] : memref<1x100xf32, #tpu.memory_space<vmem>>, vector<1x100xf32>
    %11 = vector.broadcast %10 : vector<1x100xf32> to vector<128x100xf32>
    %12 = arith.addf %9, %11 : vector<128x100xf32>
    %cst_11 = arith.constant dense<0.000000e+00> : vector<128xf32>
    %13 = vector.multi_reduction <add>, %12, %cst_11 [1] : vector<128x100xf32> to vector<128xf32>
    %14 = vector.shape_cast %13 : vector<128xf32> to vector<128x1xf32>
    %cst_12 = arith.constant 1.000000e+02 : f32
    %15 = vector.broadcast %cst_12 : f32 to vector<128x1xf32>
    %16 = arith.divf %14, %15 : vector<128x1xf32>
    %17 = vector.broadcast %16 : vector<128x1xf32> to vector<128x100xf32>
    %18 = arith.subf %12, %17 : vector<128x100xf32>
    %19 = arith.mulf %18, %18 : vector<128x100xf32>
    %cst_13 = arith.constant dense<0.000000e+00> : vector<128xf32>
    %20 = vector.multi_reduction <add>, %19, %cst_13 [1] : vector<128x100xf32> to vector<128xf32>
    %21 = vector.shape_cast %20 : vector<128xf32> to vector<128x1xf32>
    %cst_14 = arith.constant 1.000000e+02 : f32
    %22 = vector.broadcast %cst_14 : f32 to vector<128x1xf32>
    %23 = arith.divf %21, %22 : vector<128x1xf32>
    %cst_15 = arith.constant 9.99999974E-6 : f32
    %24 = vector.broadcast %cst_15 : f32 to vector<128x1xf32>
    %25 = arith.addf %23, %24 : vector<128x1xf32>
    %26 = math.rsqrt %25 : vector<128x1xf32>
    %27 = vector.broadcast %26 : vector<128x1xf32> to vector<128x100xf32>
    %28 = arith.mulf %18, %27 : vector<128x100xf32>
    %c0_16 = arith.constant 0 : index
    %c0_17 = arith.constant 0 : index
    %29 = vector.load %arg6[%c0_16, %c0_17] : memref<1x100xf32, #tpu.memory_space<vmem>>, vector<1x100xf32>
    %30 = vector.broadcast %29 : vector<1x100xf32> to vector<128x100xf32>
    %31 = arith.mulf %28, %30 : vector<128x100xf32>
    %c0_18 = arith.constant 0 : index
    %c0_19 = arith.constant 0 : index
    %32 = vector.load %arg7[%c0_18, %c0_19] : memref<1x100xf32, #tpu.memory_space<vmem>>, vector<1x100xf32>
    %33 = vector.broadcast %32 : vector<1x100xf32> to vector<128x100xf32>
    %34 = arith.addf %31, %33 : vector<128x100xf32>
    %c0_20 = arith.constant 0 : index
    %c0_21 = arith.constant 0 : index
    %35 = vector.load %arg8[%c0_20, %c0_21] : memref<100x128xf32, #tpu.memory_space<vmem>>, vector<100x128xf32>
    %cst_22 = arith.constant dense<0.000000e+00> : vector<128x128xf32>
    %36 = tpu.matmul %34, %35, %cst_22 {dimension_numbers = #tpu.dot_dimension_numbers<[1], [0], [0], [1], [0, 0, 1, 1], [], []>} : vector<128x100xf32>, vector<100x128xf32>, vector<128x128xf32> -> vector<128x128xf32>
    %c0_23 = arith.constant 0 : index
    %c0_24 = arith.constant 0 : index
    %37 = vector.load %arg9[%c0_23, %c0_24] : memref<1x128xf32, #tpu.memory_space<vmem>>, vector<1x128xf32>
    %38 = vector.broadcast %37 : vector<1x128xf32> to vector<128x128xf32>
    %39 = arith.addf %36, %38 : vector<128x128xf32>
    %c0_25 = arith.constant 0 : index
    %c0_26 = arith.constant 0 : index
    %40 = vector.load %arg10[%c0_25, %c0_26] : memref<128x128xf32, #tpu.memory_space<vmem>>, vector<128x128xf32>
    tpu.vector_store %arg10[%c0_25, %c0_26], %39 {strides = array<i32>} : memref<128x128xf32, #tpu.memory_space<vmem>>, vector<128x128xf32>,
    return
  }
  func.func @transform_0(%arg0: i32) -> (i32, i32) {
    %c0_i32 = arith.constant 0 : i32
    %c0_i32_0 = arith.constant 0 : i32
    return %arg0, %c0_i32 : i32, i32
  }
  func.func @transform_1(%arg0: i32) -> (i32, i32) {
    %c0_i32 = arith.constant 0 : i32
    %c0_i32_0 = arith.constant 0 : i32
    %c0_i32_1 = arith.constant 0 : i32
    return %c0_i32, %c0_i32_0 : i32, i32
  }
  func.func @transform_2(%arg0: i32) -> (i32, i32) {
    %c0_i32 = arith.constant 0 : i32
    %c0_i32_0 = arith.constant 0 : i32
    %c0_i32_1 = arith.constant 0 : i32
    return %c0_i32, %c0_i32_0 : i32, i32
  }
  func.func @transform_3(%arg0: i32) -> (i32, i32) {
    %c0_i32 = arith.constant 0 : i32
    %c0_i32_0 = arith.constant 0 : i32
    %c0_i32_1 = arith.constant 0 : i32
    return %c0_i32, %c0_i32_0 : i32, i32
  }
  func.func @transform_4(%arg0: i32) -> (i32, i32) {
    %c0_i32 = arith.constant 0 : i32
    %c0_i32_0 = arith.constant 0 : i32
    %c0_i32_1 = arith.constant 0 : i32
    return %c0_i32, %c0_i32_0 : i32, i32
  }
  func.func @transform_5(%arg0: i32) -> (i32, i32) {
    %c0_i32 = arith.constant 0 : i32
    %c0_i32_0 = arith.constant 0 : i32
    %c0_i32_1 = arith.constant 0 : i32
    return %c0_i32, %c0_i32_0 : i32, i32
  }
  func.func @transform_6(%arg0: i32) -> (i32, i32) {
    %c0_i32 = arith.constant 0 : i32
    %c0_i32_0 = arith.constant 0 : i32
    %c0_i32_1 = arith.constant 0 : i32
    return %c0_i32, %c0_i32_0 : i32, i32
  }
  func.func @transform_7(%arg0: i32) -> (i32, i32) {
    %c0_i32 = arith.constant 0 : i32
    %c0_i32_0 = arith.constant 0 : i32
    %c0_i32_1 = arith.constant 0 : i32
    return %c0_i32, %c0_i32_0 : i32, i32
  }
  func.func @transform_8(%arg0: i32) -> (i32, i32) {
    %c0_i32 = arith.constant 0 : i32
    %c0_i32_0 = arith.constant 0 : i32
    %c0_i32_1 = arith.constant 0 : i32
    return %c0_i32, %c0_i32_0 : i32, i32
  }
  func.func @transform_9(%arg0: i32) -> (i32, i32) {
    %c0_i32 = arith.constant 0 : i32
    %c0_i32_0 = arith.constant 0 : i32
    return %arg0, %c0_i32 : i32, i32
  }
}

</mosaic_0001>

<bundles_post_ra>
// kernel: thdlin_forward.1
= control target key start
LH: loop header
LB: loop body
LE: loop exit
PB: predicated region body
PF: predicated region fallthrough
CT: control target
= control target key end

     0   :  { %s1711_s30 = smov 0   ;;  %s2103_s0 = inlined_call_operand.vmem [shape: f32[256,16], index: 0, kind: input, shape index: {}]   ;;  %s2104_s1 = inlined_call_operand.vmem [shape: f32[16,32], index: 1, kind: input, shape index: {}]   ;;  %s2105_s2 = inlined_call_operand.vmem [shape: f32[1,32], index: 2, kind: input, shape index: {}]   ;;  %s2106_s3 = inlined_call_operand.vmem [shape: f32[32,100], index: 3, kind: input, shape index: {}]   ;;  %s2107_s4 = inlined_call_operand.vmem [shape: f32[1,100], index: 4, kind: input, shape index: {}]   ;;  %s2108_s5 = inlined_call_operand.vmem [shape: f32[1,100], index: 5, kind: input, shape index: {}]   ;;  %s2109_s6 = inlined_call_operand.vmem [shape: f32[1,100], index: 6, kind: input, shape index: {}]   ;;  %s2110_s7 = inlined_call_operand.vmem [shape: f32[100,128], index: 7, kind: input, shape index: {}]   ;;  %s2111_s8 = inlined_call_operand.vmem [shape: f32[1,128], index: 8, kind: input, shape index: {}]   ;;  %s2112_s9 = inlined_call_operand.vmem [shape: f32[256,128], index: 9, kind: output, shape index: {}]  }
   0x1 LB: > { %s1321_s10 = sadd.s32 4294967295, %s1659_s30   ;;  %p1325_p0 = scmp.ge.s32.totalorder %s1659_s30, 1  ;;  %s1659_s30 = sphi %s1711_s30, %s19_s30  }
   0x2   : > { %p288_p1 = scmp.lt.s32.totalorder %s1659_s30, 3 }
   0x4   : > { %p289_p2 = pnand %p1325_p0, %p288_p1 }
   0x5   : > { %v352_v0 = vld [vmem:[%s2104_s1] sm:$0xff] (!%p289_p2)  ;;  %v353_v1 = vld [vmem:[%s2104_s1 + $0x8] sm:$0xff] (!%p289_p2)  ;;  %s1326_s15 = sshll.u32 (!%p289_p2), %s1321_s10, 4  ;;  %vm361_vm0 = vcmask (!%p289_p2), 130048   ;;  %v573_v22 = vld [vmem:[%s2106_s3 + $0x10] sm:$0xff] (!%p289_p2)  ;;  %vm582_vm1 = vcmask (!%p289_p2), 261120  }
   0x6   : > { %292 = sbr.rel (%p289_p2) target bundleno = 1019 (0x3fb), region = 56  ;;  %v571_v2 = vld [vmem:[%s2106_s3] sm:$0xff] (!%p289_p2)  ;;  %v1563_v3 = vpack.c.bf16 (!%p289_p2), %v353_v1, %v352_v0  ;;  %p325_p3 = scmp.lt.s32.totalorder (!%p289_p2), %s1326_s15, 31  ;;  %v572_v4 = vld [vmem:[%s2106_s3 + $0x8] sm:$0xff] (!%p289_p2)  ;;  %v574_v23 = vld [vmem:[%s2106_s3 + $0x18] sm:$0xff] (!%p289_p2)  ;;  %vm776_vm2 = vcmask (!%p289_p2), 818176  }
   0x7   : > { %v1567_v5 = vpack.c.bf16 (!%p289_p2), %v572_v4, %v571_v2  ;;  %v1571_v24 = vpack.c.bf16 (!%p289_p2), %v574_v23, %v573_v22  ;;  %v1330_v25 = vld [vmem:[%s2105_s2] ss:$0 sm:$0xff] (!%p289_p2)  ;;  %vm1100_vm3 = vcmask (!%p289_p2), 1043456  }
   0x8   : > { %1564 = vmatprep.subr.bf16.mxu0 (!%p289_p2), %v1563_v3 }
   0x9   : > { %1566 = vmatpush3.bf16.msra.mxu0 (!%p289_p2), %v1563_v3  ;;  %1568 = vmatprep.subr.bf16.mxu1 (!%p289_p2), %v1567_v5 }
   0xa   : > { %1570 = vmatpush3.bf16.msra.mxu1 (!%p289_p2), %v1567_v5 }
   0xb   : > { %1572 = vmatprep.subr.bf16.mxu1 (!%p289_p2), %v1571_v24 }
   0xd   : > { %s2114_s15 = smov (!%p325_p3, %s1326_s15), 31 }
   0xe   : > { %s1327_s20 = sshll.u32 %s2114_s15, 3  ;;  %1574 = vmatpush3.bf16.msra.mxu1 %v1571_v24 }
   0xf   : > { %s1739_s23 = scalar_lea.vmem %s2103_s0, %s1327_s20  ;;  %s2082_s10 = scalar_lea.vmem %s2112_s9, %s1327_s20 }
  0x10   : > { %v336_v6 = vld [vmem:[%s1739_s23] sm:$0xff]  ;;  %v337_v7 = vld [vmem:[%s1739_s23 + $0x8] sm:$0xff]  ;;  %v338_v8 = vld [vmem:[%s1739_s23 + $0x10] sm:$0xff] }
  0x11   : > { %1457 = vmatprep.mubr.msk.f32.mxu0 %vm361_vm0, %v336_v6  ;;  %v339_v9 = vld [vmem:[%s1739_s23 + $0x18] sm:$0xff]  ;;  %v340_v10 = vld [vmem:[%s1739_s23 + $0x20] sm:$0xff]  ;;  %v341_v11 = vld [vmem:[%s1739_s23 + $0x28] sm:$0xff] }
  0x12   : > { %1458 = vmatmul.mubr.msk.f32.vlgmr.msra.gmra.mrb[0].mxu0 %vm361_vm0, %v337_v7  ;;  %v342_v12 = vld [vmem:[%s1739_s23 + $0x30] sm:$0xff]  ;;  %v343_v13 = vld [vmem:[%s1739_s23 + $0x38] sm:$0xff]  ;;  %v344_v14 = vld [vmem:[%s1739_s23 + $0x40] sm:$0xff] }
  0x13   : > { %1460 = vmatprep.mubr.msk.f32.mxu0 %vm361_vm0, %v338_v8  ;;  %v345_v15 = vld [vmem:[%s1739_s23 + $0x48] sm:$0xff]  ;;  %v346_v16 = vld [vmem:[%s1739_s23 + $0x50] sm:$0xff]  ;;  %v347_v17 = vld [vmem:[%s1739_s23 + $0x58] sm:$0xff] }
  0x14   : > { %v348_v18 = vld [vmem:[%s1739_s23 + $0x60] sm:$0xff]  ;;  %v349_v19 = vld [vmem:[%s1739_s23 + $0x68] sm:$0xff]  ;;  %v350_v20 = vld [vmem:[%s1739_s23 + $0x70] sm:$0xff] }
  0x15   : > { %v351_v21 = vld [vmem:[%s1739_s23 + $0x78] sm:$0xff] }
  0x16   : > { %1461 = vmatmul.mubr.msk.f32.gmra.mrb[2].mxu0 %vm361_vm0, %v339_v9 }
  0x17   : > { %1463 = vmatprep.mubr.msk.f32.mxu0 %vm361_vm0, %v340_v10  ;;  %v1347_v10 = vld [vmem:[%s2107_s4] ss:$0 sm:$0xff] }
  0x1a   : > { %1464 = vmatmul.mubr.msk.f32.gmra.mrb[4].mxu0 %vm361_vm0, %v341_v11 }
  0x1b   : > { %1466 = vmatprep.mubr.msk.f32.mxu0 %vm361_vm0, %v342_v12 }
  0x1e   : > { %1467 = vmatmul.mubr.msk.f32.gmra.mrb[6].mxu0 %vm361_vm0, %v343_v13 }
  0x1f   : > { %1469 = vmatprep.mubr.msk.f32.mxu0 %vm361_vm0, %v344_v14 }
  0x22   : > { %1470 = vmatmul.mubr.msk.f32.gmra.mrb[8].mxu0 %vm361_vm0, %v345_v15 }
  0x23   : > { %1472 = vmatprep.mubr.msk.f32.mxu0 %vm361_vm0, %v346_v16 }
  0x26   : > { %1473 = vmatmul.mubr.msk.f32.gmra.mrb[10].mxu0 %vm361_vm0, %v347_v17 }
  0x27   : > { %1475 = vmatprep.mubr.msk.f32.mxu0 %vm361_vm0, %v348_v18 }
  0x2a   : > { %1476 = vmatmul.mubr.msk.f32.gmra.mrb[12].mxu0 %vm361_vm0, %v349_v19 }
  0x2b   : > { %1478 = vmatprep.mubr.msk.f32.mxu0 %vm361_vm0, %v350_v20 }
  0x2e   : > { %1479 = vmatmul.mubr.msk.f32.gmra.mrb[14].mxu0 %vm361_vm0, %v351_v21 }
  0xe5   : > { %v1459_v26 = vpop.f32.mrb[0].mxu0 }
  0xe6   : > { %v482_v27 = vadd.f32 %v1459_v26, %v1330_v25  ;;  %v476_v28 = vpop.f32.mrb[1].mxu0 }
  0xe7   : > { %v477_v29 = vadd.f32 %v1330_v25, %v476_v28 }
  0xe8   : > { %v556_v32 = vmax.f32 %v482_v27, 0.0 }
  0xe9   : > { %v555_v30 = vmax.f32 %v477_v29, 0.0  ;;  %v1462_v31 = vpop.f32.mrb[2].mxu0 }
  0xea   : > { %v492_v33 = vadd.f32 %v1462_v31, %v1330_v25  ;;  %v486_v34 = vpop.f32.mrb[3].mxu0 }
  0xeb   : > { %v487_v35 = vadd.f32 %v1330_v25, %v486_v34  ;;  %1489 = vmatprep.mubr.msk.f32.mxu1 %vm582_vm1, %v555_v30 }
  0xec   : > { %1490 = vmatmul.mubr.msk.f32.vlgmr.msra.gmra.mrb[0].mxu1 %vm582_vm1, %v556_v32  ;;  %v558_v38 = vmax.f32 %v492_v33, 0.0 }
  0xed   : > { %v557_v36 = vmax.f32 %v487_v35, 0.0  ;;  %v1465_v37 = vpop.f32.mrb[4].mxu0 }
  0xee   : > { %v502_v39 = vadd.f32 %v1465_v37, %v1330_v25  ;;  %v496_v40 = vpop.f32.mrb[5].mxu0 }
  0xef   : > { %v497_v41 = vadd.f32 %v1330_v25, %v496_v40  ;;  %1492 = vmatprep.mubr.msk.f32.mxu1 %vm582_vm1, %v557_v36 }
  0xf0   : > { %1493 = vmatmul.mubr.msk.f32.gmra.mrb[2].mxu1 %vm582_vm1, %v558_v38  ;;  %v560_v44 = vmax.f32 %v502_v39, 0.0 }
  0xf1   : > { %v559_v42 = vmax.f32 %v497_v41, 0.0  ;;  %v1468_v43 = vpop.f32.mrb[6].mxu0 }
  0xf2   : > { %v512_v45 = vadd.f32 %v1468_v43, %v1330_v25  ;;  %v506_v46 = vpop.f32.mrb[7].mxu0 }
  0xf3   : > { %v507_v47 = vadd.f32 %v1330_v25, %v506_v46  ;;  %1495 = vmatprep.mubr.msk.f32.mxu1 %vm582_vm1, %v559_v42 }
  0xf4   : > { %1496 = vmatmul.mubr.msk.f32.gmra.mrb[4].mxu1 %vm582_vm1, %v560_v44  ;;  %v562_v50 = vmax.f32 %v512_v45, 0.0 }
  0xf5   : > { %v561_v48 = vmax.f32 %v507_v47, 0.0  ;;  %v1471_v49 = vpop.f32.mrb[8].mxu0 }
  0xf6   : > { %v522_v51 = vadd.f32 %v1471_v49, %v1330_v25  ;;  %v516_v52 = vpop.f32.mrb[9].mxu0 }
  0xf7   : > { %v517_v53 = vadd.f32 %v1330_v25, %v516_v52  ;;  %1498 = vmatprep.mubr.msk.f32.mxu1 %vm582_vm1, %v561_v48 }
  0xf8   : > { %1499 = vmatmul.mubr.msk.f32.gmra.mrb[6].mxu1 %vm582_vm1, %v562_v50  ;;  %v564_v56 = vmax.f32 %v522_v51, 0.0 }
  0xf9   : > { %v563_v54 = vmax.f32 %v517_v53, 0.0  ;;  %v1474_v55 = vpop.f32.mrb[10].mxu0 }
  0xfa   : > { %v532_v57 = vadd.f32 %v1474_v55, %v1330_v25  ;;  %v526_v58 = vpop.f32.mrb[11].mxu0 }
  0xfb   : > { %v527_v59 = vadd.f32 %v1330_v25, %v526_v58  ;;  %1501 = vmatprep.mubr.msk.f32.mxu1 %vm582_vm1, %v563_v54 }
  0xfc   : > { %1502 = vmatmul.mubr.msk.f32.gmra.mrb[8].mxu1 %vm582_vm1, %v564_v56  ;;  %v566_v62 = vmax.f32 %v532_v57, 0.0 }
  0xfd   : > { %v565_v60 = vmax.f32 %v527_v59, 0.0  ;;  %v1477_v61 = vpop.f32.mrb[12].mxu0 }
  0xfe   : > { %v542_v63 = vadd.f32 %v1477_v61, %v1330_v25  ;;  %v536_v0 = vpop.f32.mrb[13].mxu0 }
  0xff   : > { %v537_v1 = vadd.f32 %v1330_v25, %v536_v0  ;;  %1504 = vmatprep.mubr.msk.f32.mxu1 %vm582_vm1, %v565_v60 }
 0x100   : > { %v568_v2 = vmax.f32 %v542_v63, 0.0  ;;  %1505 = vmatmul.mubr.msk.f32.gmra.mrb[10].mxu1 %vm582_vm1, %v566_v62 }
 0x101   : > { %v567_v3 = vmax.f32 %v537_v1, 0.0  ;;  %v1480_v4 = vpop.f32.mrb[14].mxu0 }
 0x102   : > { %v552_v5 = vadd.f32 %v1480_v4, %v1330_v25  ;;  %v546_v6 = vpop.f32.mrb[15].mxu0 }
 0x103   : > { %1507 = vmatprep.mubr.msk.f32.mxu1 %vm582_vm1, %v567_v3  ;;  %v547_v7 = vadd.f32 %v1330_v25, %v546_v6 }
 0x104   : > { %v570_v8 = vmax.f32 %v552_v5, 0.0  ;;  %1508 = vmatmul.mubr.msk.f32.gmra.mrb[12].mxu1 %vm582_vm1, %v568_v2 }
 0x105   : > { %v569_v9 = vmax.f32 %v547_v7, 0.0 }
 0x107   : > { %1510 = vmatprep.mubr.msk.f32.mxu1 %vm582_vm1, %v569_v9 }
 0x108   : > { %1511 = vmatmul.mubr.msk.f32.gmra.mrb[14].mxu1 %vm582_vm1, %v570_v8 }
 0x1bf   : > { %v1491_v11 = vpop.f32.mrb[0].mxu1 }
 0x1c0   : > { %v1801_v12 = vadd.f32 %v1491_v11, %v1347_v10  ;;  %v697_v13 = vpop.f32.mrb[1].mxu1 }
 0x1c1   : > { %v1803_v14 = vadd.f32 %v1347_v10, %v697_v13 }
 0x1c2   : > { %v780_v15 = vsel %vm776_vm2, %v1801_v12, 0.0 }
 0x1c3   : > { %781 = vadd.xlane.f32.xlu0 %v780_v15  ;;  %v1494_v16 = vpop.f32.mrb[2].mxu1  ;;  %v777_v21 = vsel %vm776_vm2, %v1803_v14, 0.0 }
 0x1c4   : > { %v1807_v17 = vadd.f32 %v1494_v16, %v1347_v10  ;;  %v707_v18 = vpop.f32.mrb[3].mxu1 }
 0x1c5   : > { %v1809_v19 = vadd.f32 %v1347_v10, %v707_v18 }
 0x1c6   : > { %v786_v20 = vsel %vm776_vm2, %v1807_v17, 0.0 }
 0x1c7   : > { %787 = vadd.xlane.f32.xlu1 %v786_v20  ;;  %v1497_v22 = vpop.f32.mrb[4].mxu1  ;;  %778 = vadd.xlane.f32.xlu0 %v777_v21  ;;  %v783_v26 = vsel %vm776_vm2, %v1809_v19, 0.0 }
 0x1c8   : > { %v1815_v23 = vadd.f32 %v1497_v22, %v1347_v10  ;;  %v717_v24 = vpop.f32.mrb[5].mxu1 }
 0x1c9   : > { %v1817_v25 = vadd.f32 %v1347_v10, %v717_v24 }
 0x1ca   : > { %v792_v27 = vsel %vm776_vm2, %v1815_v23, 0.0 }
 0x1cb   : > { %v1500_v28 = vpop.f32.mrb[6].mxu1  ;;  %784 = vadd.xlane.f32.xlu1 %v783_v26  ;;  %793 = vadd.xlane.f32.xlu0 %v792_v27  ;;  %v789_v31 = vsel %vm776_vm2, %v1817_v25, 0.0 }
 0x1cc   : > { %v727_v29 = vpop.f32.mrb[7].mxu1  ;;  %v1823_v30 = vadd.f32 %v1500_v28, %v1347_v10  ;;  %v1033_v28 = vld [vmem:[%s2110_s7 + $0x8] sm:$0xff] }
 0x1cd   : > { %v1827_v34 = vadd.f32 %v1347_v10, %v727_v29 }
 0x1ce   : > { %v798_v35 = vsel %vm776_vm2, %v1823_v30, 0.0 }
 0x1cf   : > { %v1503_v32 = vpop.f32.mrb[8].mxu1  ;;  %790 = vadd.xlane.f32.xlu0 %v789_v31  ;;  %v795_v42 = vsel %vm776_vm2, %v1827_v34, 0.0 }
 0x1d0   : > { %v737_v33 = vpop.f32.mrb[9].mxu1  ;;  %v1841_v45 = vadd.f32 %v1503_v32, %v1347_v10 }
 0x1d1   : > { %v1833_v39 = vadd.f32 %v1347_v10, %v737_v33 }
 0x1d2   : > { %v804_v53 = vsel %vm776_vm2, %v1841_v45, 0.0 }
 0x1d3   : > { %v1506_v36 = vpop.f32.mrb[10].mxu1  ;;  %799 = vadd.xlane.f32.xlu0 %v798_v35  ;;  %v801_v48 = vsel %vm776_vm2, %v1833_v39, 0.0 }
 0x1d4   : > { %v1831_v37 = vadd.f32 %v1506_v36, %v1347_v10  ;;  %v747_v38 = vpop.f32.mrb[11].mxu1 }
 0x1d5   : > { %v1835_v40 = vadd.f32 %v1347_v10, %v747_v38 }
 0x1d6   : > { %v810_v41 = vsel %vm776_vm2, %v1831_v37, 0.0 }
 0x1d7   : > { %811 = vadd.xlane.f32.xlu1 %v810_v41  ;;  %796 = vadd.xlane.f32.xlu0 %v795_v42  ;;  %v1509_v43 = vpop.f32.mrb[12].mxu1  ;;  %v807_v47 = vsel %vm776_vm2, %v1835_v40, 0.0 }
 0x1d8   : > { %v757_v44 = vpop.f32.mrb[13].mxu1  ;;  %v1843_v46 = vadd.f32 %v1509_v43, %v1347_v10 }
 0x1d9   : > { %v1849_v51 = vadd.f32 %v1347_v10, %v757_v44  ;;  %v1034_v44 = vld [vmem:[%s2110_s7 + $0x10] sm:$0xff] }
 0x1da   : > { %v816_v52 = vsel %vm776_vm2, %v1843_v46, 0.0 }
 0x1db   : > { %808 = vadd.xlane.f32.xlu1 %v807_v47  ;;  %802 = vadd.xlane.f32.xlu0 %v801_v48  ;;  %v1512_v49 = vpop.f32.mrb[14].mxu1  ;;  %v813_v55 = vsel %vm776_vm2, %v1849_v51, 0.0 }
 0x1dc   : > { %v767_v50 = vpop.f32.mrb[15].mxu1  ;;  %v1859_v56 = vadd.f32 %v1512_v49, %v1347_v10 }
 0x1dd   : > { %v1855_v54 = vadd.f32 %v1347_v10, %v767_v50 }
 0x1de   : > { %v822_v58 = vsel %vm776_vm2, %v1859_v56, 0.0 }
 0x1df   : > { %817 = vadd.xlane.f32.xlu1 %v816_v52  ;;  %805 = vadd.xlane.f32.xlu0 %v804_v53  ;;  %v819_v57 = vsel %vm776_vm2, %v1855_v54, 0.0 }
 0x1e3   : > { %814 = vadd.xlane.f32.xlu1 %v813_v55 }
 0x1e7   : > { %820 = vadd.xlane.f32.xlu1 %v819_v57 }
 0x1eb   : > { %823 = vadd.xlane.f32.xlu1 %v822_v58 }
 0x250   : > { %v782_v59 = vpop.xlane.xlu0 %781 }
 0x251   : > { %v827_v60 = vmul.f32 0.01, %v782_v59 }
 0x253   : > { %v1866_v61 = vsub.f32 %v1801_v12, %v827_v60  ;;  %v1036_v60 = vld [vmem:[%s2110_s7 + $0x20] sm:$0xff] }
 0x254   : > { %v788_v62 = vpop.xlane.xlu1 %787  ;;  %v779_v63 = vpop.xlane.xlu0 %778 }
 0x255   : > { %v829_v0 = vmul.f32 0.01, %v788_v62  ;;  %v826_v1 = vmul.f32 0.01, %v779_v63  ;;  %v859_v2 = vmul.f32 %v1866_v61, %v1866_v61 }
 0x257   : > { %v1871_v3 = vsub.f32 %v1807_v17, %v829_v0  ;;  %v1874_v4 = vsub.f32 %v1803_v14, %v826_v1  ;;  %v877_v5 = vsel %vm776_vm2, %v859_v2, 0.0 }
 0x258   : > { %878 = vadd.xlane.f32.xlu1 %v877_v5  ;;  %v785_v6 = vpop.xlane.xlu1 %784  ;;  %v794_v7 = vpop.xlane.xlu0 %793 }
 0x259   : > { %v828_v8 = vmul.f32 0.01, %v785_v6  ;;  %v831_v9 = vmul.f32 0.01, %v794_v7  ;;  %v861_v10 = vmul.f32 %v1871_v3, %v1871_v3  ;;  %v858_v11 = vmul.f32 %v1874_v4, %v1874_v4 }
 0x25b   : > { %v1882_v12 = vsub.f32 %v1809_v19, %v828_v8  ;;  %v1885_v13 = vsub.f32 %v1815_v23, %v831_v9  ;;  %v883_v14 = vsel %vm776_vm2, %v861_v10, 0.0  ;;  %v874_v15 = vsel %vm776_vm2, %v858_v11, 0.0  ;;  %v1038_v9 = vld [vmem:[%s2110_s7 + $0x30] sm:$0xff] }
 0x25c   : > { %884 = vadd.xlane.f32.xlu1 %v883_v14  ;;  %875 = vadd.xlane.f32.xlu0 %v874_v15  ;;  %v791_v16 = vpop.xlane.xlu0 %790 }
 0x25d   : > { %v830_v17 = vmul.f32 0.01, %v791_v16  ;;  %v860_v18 = vmul.f32 %v1882_v12, %v1882_v12  ;;  %v863_v21 = vmul.f32 %v1885_v13, %v1885_v13 }
 0x25f   : > { %v1892_v20 = vsub.f32 %v1817_v25, %v830_v17  ;;  %v880_v19 = vsel %vm776_vm2, %v860_v18, 0.0  ;;  %v889_v26 = vsel %vm776_vm2, %v863_v21, 0.0  ;;  %v1032_v25 = vld [vmem:[%s2110_s7] sm:$0xff] }
 0x260   : > { %881 = vadd.xlane.f32.xlu0 %v880_v19  ;;  %v800_v22 = vpop.xlane.xlu0 %799  ;;  %v1575_v32 = vpack.c.bf16 %v1033_v28, %v1032_v25  ;;  %v1040_v19 = vld [vmem:[%s2110_s7 + $0x40] sm:$0xff] }
 0x261   : > { %v833_v23 = vmul.f32 0.01, %v800_v22  ;;  %v862_v27 = vmul.f32 %v1892_v20, %v1892_v20 }
 0x262   : > { %1576 = vmatprep.subr.bf16.mxu0 %v1575_v32  ;;  %1599 = vmatprep.subr.bf16.mxu1 %v1575_v32 }
 0x263   : > { %v1898_v24 = vsub.f32 %v1823_v30, %v833_v23  ;;  %v886_v38 = vsel %vm776_vm2, %v862_v27, 0.0  ;;  %1578 = vmatpush3.bf16.msra.mxu0 %v1575_v32  ;;  %1606 = vmatpush3.bf16.msra.mxu1 %v1575_v32 }
 0x264   : > { %v812_v29 = vpop.xlane.xlu1 %811  ;;  %890 = vadd.xlane.f32.xlu0 %v889_v26  ;;  %v797_v31 = vpop.xlane.xlu0 %796 }
 0x265   : > { %v837_v33 = vmul.f32 0.01, %v812_v29  ;;  %v832_v30 = vmul.f32 0.01, %v797_v31  ;;  %v865_v41 = vmul.f32 %v1898_v24, %v1898_v24  ;;  %v1042_v29 = vld [vmem:[%s2110_s7 + $0x50] sm:$0xff]  ;;  %v1043_v31 = vld [vmem:[%s2110_s7 + $0x58] sm:$0xff] }
 0x267   : > { %v1910_v35 = vsub.f32 %v1831_v37, %v837_v33  ;;  %v1913_v36 = vsub.f32 %v1827_v34, %v832_v30  ;;  %v1035_v37 = vld [vmem:[%s2110_s7 + $0x18] sm:$0xff]  ;;  %v895_v57 = vsel %vm776_vm2, %v865_v41, 0.0  ;;  %v1595_v33 = vpack.c.bf16 %v1043_v31, %v1042_v29 }
 0x268   : > { %v809_v42 = vpop.xlane.xlu1 %808  ;;  %887 = vadd.xlane.f32.xlu0 %v886_v38  ;;  %v803_v43 = vpop.xlane.xlu0 %802  ;;  %v1579_v50 = vpack.c.bf16 %v1035_v37, %v1034_v44 }
 0x269   : > { %v836_v34 = vmul.f32 0.01, %v809_v42  ;;  %v834_v47 = vmul.f32 0.01, %v803_v43  ;;  %v869_v48 = vmul.f32 %v1910_v35, %v1910_v35  ;;  %v864_v49 = vmul.f32 %v1913_v36, %v1913_v36  ;;  %v1044_v42 = vld [vmem:[%s2110_s7 + $0x60] sm:$0xf] }
 0x26a   : > { %1580 = vmatprep.subr.bf16.mxu0 %v1579_v50  ;;  %1600 = vmatprep.subr.bf16.mxu1 %v1579_v50 }
 0x26b   : > { %v1929_v52 = vsub.f32 %v1835_v40, %v836_v34  ;;  %v1932_v53 = vsub.f32 %v1833_v39, %v834_v47  ;;  %v907_v55 = vsel %vm776_vm2, %v869_v48, 0.0  ;;  %v1037_v40 = vld [vmem:[%s2110_s7 + $0x28] sm:$0xff]  ;;  %v892_v0 = vsel %vm776_vm2, %v864_v49, 0.0  ;;  %1582 = vmatpush3.bf16.msra.mxu0 %v1579_v50  ;;  %1607 = vmatpush3.bf16.msra.mxu1 %v1579_v50 }
 0x26c   : > { %908 = vadd.xlane.f32.xlu1 %v907_v55  ;;  %v818_v58 = vpop.xlane.xlu1 %817  ;;  %896 = vadd.xlane.f32.xlu0 %v895_v57  ;;  %v806_v59 = vpop.xlane.xlu0 %805  ;;  %v1583_v1 = vpack.c.bf16 %v1037_v40, %v1036_v60 }
 0x26d   : > { %v839_v62 = vmul.f32 0.01, %v818_v58  ;;  %v835_v63 = vmul.f32 0.01, %v806_v59  ;;  %v868_v39 = vmul.f32 %v1929_v52, %v1929_v52  ;;  %v866_v7 = vmul.f32 %v1932_v53, %v1932_v53 }
 0x26e   : > { %1584 = vmatprep.subr.bf16.mxu0 %v1583_v1  ;;  %1601 = vmatprep.subr.bf16.mxu1 %v1583_v1 }
 0x26f   : > { %v1946_v2 = vsub.f32 %v1843_v46, %v839_v62  ;;  %v1949_v5 = vsub.f32 %v1841_v45, %v835_v63  ;;  %v904_v6 = vsel %vm776_vm2, %v868_v39, 0.0  ;;  %v1039_v46 = vld [vmem:[%s2110_s7 + $0x38] sm:$0xff]  ;;  %1586 = vmatpush3.bf16.msra.mxu0 %v1583_v1  ;;  %1608 = vmatpush3.bf16.msra.mxu1 %v1583_v1  ;;  %v898_v16 = vsel %vm776_vm2, %v866_v7, 0.0  ;;  %v2004_v7 = vld [vmem:[%s2108_s5] ss:$0 sm:$0xff] }
 0x270   : > { %905 = vadd.xlane.f32.xlu1 %v904_v6  ;;  %v815_v8 = vpop.xlane.xlu1 %814  ;;  %893 = vadd.xlane.f32.xlu0 %v892_v0  ;;  %v1587_v11 = vpack.c.bf16 %v1039_v46, %v1038_v9 }
 0x271   : > { %v838_v10 = vmul.f32 0.01, %v815_v8  ;;  %v871_v45 = vmul.f32 %v1946_v2, %v1946_v2  ;;  %v867_v17 = vmul.f32 %v1949_v5, %v1949_v5 }
 0x272   : > { %1588 = vmatprep.subr.bf16.mxu0 %v1587_v11  ;;  %1602 = vmatprep.subr.bf16.mxu1 %v1587_v11 }
 0x273   : > { %v1963_v14 = vsub.f32 %v1849_v51, %v838_v10  ;;  %v913_v15 = vsel %vm776_vm2, %v871_v45, 0.0  ;;  %v1041_v51 = vld [vmem:[%s2110_s7 + $0x48] sm:$0xff]  ;;  %1590 = vmatpush3.bf16.msra.mxu0 %v1587_v11  ;;  %1609 = vmatpush3.bf16.msra.mxu1 %v1587_v11  ;;  %v901_v25 = vsel %vm776_vm2, %v867_v17, 0.0 }
 0x274   : > { %914 = vadd.xlane.f32.xlu1 %v913_v15  ;;  %v821_v18 = vpop.xlane.xlu1 %820  ;;  %899 = vadd.xlane.f32.xlu0 %v898_v16  ;;  %v1591_v23 = vpack.c.bf16 %v1041_v51, %v1040_v19 }
 0x275   : > { %v840_v21 = vmul.f32 0.01, %v821_v18  ;;  %v870_v22 = vmul.f32 %v1963_v14, %v1963_v14  ;;  %v2012_v18 = vld [vmem:[%s2109_s6] ss:$0 sm:$0xff] }
 0x276   : > { %1592 = vmatprep.subr.bf16.mxu0 %v1591_v23  ;;  %1603 = vmatprep.subr.bf16.mxu1 %v1591_v23 }
 0x277   : > { %v1978_v26 = vsub.f32 %v1855_v54, %v840_v21  ;;  %v910_v27 = vsel %vm776_vm2, %v870_v22, 0.0  ;;  %1594 = vmatpush3.bf16.msra.mxu0 %v1591_v23  ;;  %1610 = vmatpush3.bf16.msra.mxu1 %v1591_v23 }
 0x278   : > { %911 = vadd.xlane.f32.xlu1 %v910_v27  ;;  %v824_v28 = vpop.xlane.xlu1 %823  ;;  %902 = vadd.xlane.f32.xlu0 %v901_v25 }
 0x279   : > { %v841_v32 = vmul.f32 0.01, %v824_v28  ;;  %v872_v54 = vmul.f32 %v1978_v26, %v1978_v26  ;;  %1596 = vmatprep.subr.bf16.mxu0 %v1595_v33  ;;  %1604 = vmatprep.subr.bf16.mxu1 %v1595_v33 }
 0x27b   : > { %v1991_v30 = vsub.f32 %v1859_v56, %v841_v32  ;;  %v916_v38 = vsel %vm776_vm2, %v872_v54, 0.0  ;;  %1598 = vmatpush3.bf16.msra.mxu0 %v1595_v33  ;;  %1611 = vmatpush3.bf16.msra.mxu1 %v1595_v33 }
 0x27c   : > { %917 = vadd.xlane.f32.xlu1 %v916_v38  ;;  %1537 = vmatprep.subr.msk.mxu0 %vm1100_vm3, %v1044_v42 }
 0x27d   : > { %v873_v41 = vmul.f32 %v1991_v30, %v1991_v30  ;;  %1605 = vmatprep.subr.msk.mxu1 %vm1100_vm3, %v1044_v42 }
 0x27f   : > { %v919_v43 = vsel %vm776_vm2, %v873_v41, 0.0  ;;  %1538 = vmatpush3.msk.msra.mxu0 %vm1100_vm3, %v1044_v42  ;;  %1612 = vmatpush3.msk.msra.mxu1 %vm1100_vm3, %v1044_v42 }
 0x280   : > { %920 = vadd.xlane.f32.xlu1 %v919_v43 }
 0x2e5   : > { %v879_v56 = vpop.xlane.xlu1 %878 }
 0x2e6   : > { %v923_v44 = vmul.f32 0.01, %v879_v56 }
 0x2e8   : > { %v939_v37 = vadd.f32 1e-05, %v923_v44 }
 0x2e9   : > { %v885_v34 = vpop.xlane.xlu1 %884  ;;  %v876_v47 = vpop.xlane.xlu0 %875 }
 0x2ea   : > { %1621 = vrsqrt.f32 %v939_v37  ;;  %v925_v48 = vmul.f32 0.01, %v885_v34  ;;  %v922_v49 = vmul.f32 0.01, %v876_v47 }
 0x2ec   : > { %v941_v50 = vadd.f32 1e-05, %v925_v48  ;;  %v938_v55 = vadd.f32 1e-05, %v922_v49 }
 0x2ed   : > { %v882_v57 = vpop.xlane.xlu0 %881 }
 0x2ee   : > { %1623 = vrsqrt.f32 %v941_v50  ;;  %v924_v58 = vmul.f32 0.01, %v882_v57 }
 0x2ef   : > { %1625 = vrsqrt.f32 %v938_v55 }
 0x2f0   : > { %v940_v59 = vadd.f32 1e-05, %v924_v58 }
 0x2f1   : > { %v891_v60 = vpop.xlane.xlu0 %890 }
 0x2f2   : > { %1627 = vrsqrt.f32 %v940_v59  ;;  %v927_v40 = vmul.f32 0.01, %v891_v60 }
 0x2f4   : > { %v1622_v62 = vpop.eup %1621  ;;  %v943_v63 = vadd.f32 1e-05, %v927_v40 }
 0x2f5   : > { %v888_v39 = vpop.xlane.xlu0 %887  ;;  %v971_v1 = vmul.f32 %v1622_v62, %v1866_v61 }
 0x2f6   : > { %1629 = vrsqrt.f32 %v943_v63  ;;  %v926_v0 = vmul.f32 0.01, %v888_v39 }
 0x2f7   : > { %v994_v16 = vmul.f32 %v2004_v7, %v971_v1 }
 0x2f8   : > { %v1624_v6 = vpop.eup %1623  ;;  %v942_v8 = vadd.f32 1e-05, %v926_v0 }
 0x2f9   : > { %v1626_v9 = vpop.eup %1625  ;;  %v909_v46 = vpop.xlane.xlu1 %908  ;;  %v973_v17 = vmul.f32 %v1624_v6, %v1871_v3  ;;  %v1017_v3 = vadd.f32 %v2012_v18, %v994_v16 }
 0x2fa   : > { %v897_v10 = vpop.xlane.xlu0 %896  ;;  %1631 = vrsqrt.f32 %v942_v8  ;;  %v933_v45 = vmul.f32 0.01, %v909_v46  ;;  %v970_v15 = vmul.f32 %v1626_v9, %v1874_v4 }
 0x2fb   : > { %v929_v11 = vmul.f32 0.01, %v897_v10  ;;  %v996_v31 = vmul.f32 %v2004_v7, %v973_v17 }
 0x2fc   : > { %v1628_v61 = vpop.eup %1627  ;;  %v949_v19 = vadd.f32 1e-05, %v933_v45  ;;  %v993_v21 = vmul.f32 %v2004_v7, %v970_v15 }
 0x2fd   : > { %v945_v51 = vadd.f32 1e-05, %v929_v11  ;;  %v906_v22 = vpop.xlane.xlu1 %905  ;;  %v972_v27 = vmul.f32 %v1628_v61, %v1882_v12  ;;  %v1019_v44 = vadd.f32 %v2012_v18, %v996_v31 }
 0x2fe   : > { %v894_v23 = vpop.xlane.xlu0 %893  ;;  %1633 = vrsqrt.f32 %v949_v19  ;;  %v932_v4 = vmul.f32 0.01, %v906_v22  ;;  %v1016_v28 = vadd.f32 %v2012_v18, %v993_v21 }
 0x2ff   : > { %v928_v25 = vmul.f32 0.01, %v894_v23  ;;  %1635 = vrsqrt.f32 %v945_v51  ;;  %v995_v29 = vmul.f32 %v2004_v7, %v972_v27 }
 0x300   : > { %v1630_v32 = vpop.eup %1629  ;;  %v948_v54 = vadd.f32 1e-05, %v932_v4  ;;  %1539 = vmatprep.mubr.msk.f32.mxu0 %vm776_vm2, %v1016_v28 }
 0x301   : > { %v944_v33 = vadd.f32 1e-05, %v928_v25  ;;  %1540 = vmatmul.mubr.msk.f32.vlgmr.msra.gmra.mrb[16].mxu0 %vm776_vm2, %v1017_v3  ;;  %v915_v12 = vpop.xlane.xlu1 %914  ;;  %v1018_v41 = vadd.f32 %v2012_v18, %v995_v29  ;;  %v975_v56 = vmul.f32 %v1630_v32, %v1885_v13 }
 0x302   : > { %v900_v38 = vpop.xlane.xlu0 %899  ;;  %1637 = vrsqrt.f32 %v948_v54  ;;  %v935_v42 = vmul.f32 0.01, %v915_v12 }
 0x303   : > { %v930_v43 = vmul.f32 0.01, %v900_v38  ;;  %1639 = vrsqrt.f32 %v944_v33  ;;  %1542 = vmatprep.mubr.msk.f32.mxu0 %vm776_vm2, %v1018_v41  ;;  %v998_v58 = vmul.f32 %v2004_v7, %v975_v56 }
 0x304   : > { %v1632_v37 = vpop.eup %1631  ;;  %v951_v34 = vadd.f32 1e-05, %v935_v42 }
 0x305   : > { %v946_v47 = vadd.f32 1e-05, %v930_v43  ;;  %1543 = vmatmul.mubr.msk.f32.gmra.mrb[18].mxu0 %vm776_vm2, %v1019_v44  ;;  %v912_v48 = vpop.xlane.xlu1 %911  ;;  %v974_v50 = vmul.f32 %v1632_v37, %v1892_v20  ;;  %v1021_v20 = vadd.f32 %v2012_v18, %v998_v58  ;;  %v1366_v44 = vld [vmem:[%s2111_s8] ss:$0 sm:$0xff] }
 0x306   : > { %v903_v49 = vpop.xlane.xlu0 %902  ;;  %1641 = vrsqrt.f32 %v951_v34  ;;  %v934_v55 = vmul.f32 0.01, %v912_v48 }
 0x307   : > { %v931_v57 = vmul.f32 0.01, %v903_v49  ;;  %1643 = vrsqrt.f32 %v946_v47  ;;  %v997_v13 = vmul.f32 %v2004_v7, %v974_v50 }
 0x308   : > { %v1634_v59 = vpop.eup %1633  ;;  %v950_v60 = vadd.f32 1e-05, %v934_v55 }
 0x309   : > { %v947_v40 = vadd.f32 1e-05, %v931_v57  ;;  %v1636_v62 = vpop.eup %1635  ;;  %v981_v63 = vmul.f32 %v1634_v59, %v1910_v35  ;;  %v918_v39 = vpop.xlane.xlu1 %917  ;;  %v1020_v0 = vadd.f32 %v2012_v18, %v997_v13 }
 0x30a   : > { %1645 = vrsqrt.f32 %v950_v60  ;;  %v936_v1 = vmul.f32 0.01, %v918_v39  ;;  %v977_v6 = vmul.f32 %v1636_v62, %v1898_v24 }
 0x30b   : > { %1647 = vrsqrt.f32 %v947_v40  ;;  %1545 = vmatprep.mubr.msk.f32.mxu0 %vm776_vm2, %v1020_v0  ;;  %v1004_v10 = vmul.f32 %v2004_v7, %v981_v63 }
 0x30c   : > { %v1638_v8 = vpop.eup %1637  ;;  %v952_v9 = vadd.f32 1e-05, %v936_v1  ;;  %1546 = vmatmul.mubr.msk.f32.gmra.mrb[20].mxu0 %vm776_vm2, %v1021_v20  ;;  %v1000_v17 = vmul.f32 %v2004_v7, %v977_v6 }
 0x30d   : > { %v1640_v46 = vpop.eup %1639  ;;  %v921_v35 = vpop.xlane.xlu1 %920  ;;  %v980_v45 = vmul.f32 %v1638_v8, %v1929_v52  ;;  %v1027_v21 = vadd.f32 %v2012_v18, %v1004_v10 }
 0x30e   : > { %1649 = vrsqrt.f32 %v952_v9  ;;  %v937_v11 = vmul.f32 0.01, %v921_v35  ;;  %v976_v15 = vmul.f32 %v1640_v46, %v1913_v36  ;;  %v1023_v27 = vadd.f32 %v2012_v18, %v1000_v17 }
 0x30f   : > { %v1003_v16 = vmul.f32 %v2004_v7, %v980_v45 }
 0x310   : > { %v1642_v61 = vpop.eup %1641  ;;  %v953_v24 = vadd.f32 1e-05, %v937_v11  ;;  %v999_v19 = vmul.f32 %v2004_v7, %v976_v15 }
 0x311   : > { %v1644_v51 = vpop.eup %1643  ;;  %v1026_v22 = vadd.f32 %v2012_v18, %v1003_v16  ;;  %v983_v36 = vmul.f32 %v1642_v61, %v1946_v2 }
 0x312   : > { %1651 = vrsqrt.f32 %v953_v24  ;;  %v1022_v52 = vadd.f32 %v2012_v18, %v999_v19  ;;  %v978_v23 = vmul.f32 %v1644_v51, %v1932_v53 }
 0x313   : > { %1554 = vmatprep.mubr.msk.f32.mxu1 %vm776_vm2, %v1026_v22  ;;  %v1006_v29 = vmul.f32 %v2004_v7, %v983_v36 }
 0x314   : > { %v1646_v4 = vpop.eup %1645  ;;  %1548 = vmatprep.mubr.msk.f32.mxu0 %vm776_vm2, %v1022_v52  ;;  %1555 = vmatmul.mubr.msk.f32.vlgmr.msra.gmra.mrb[16].mxu1 %vm776_vm2, %v1027_v21  ;;  %v1001_v25 = vmul.f32 %v2004_v7, %v978_v23 }
 0x315   : > { %v1648_v28 = vpop.eup %1647  ;;  %1549 = vmatmul.mubr.msk.f32.gmra.mrb[22].mxu0 %vm776_vm2, %v1023_v27  ;;  %v982_v3 = vmul.f32 %v1646_v4, %v1963_v14  ;;  %v1029_v38 = vadd.f32 %v2012_v18, %v1006_v29 }
 0x316   : > { %v1024_v53 = vadd.f32 %v2012_v18, %v1001_v25  ;;  %v979_v2 = vmul.f32 %v1648_v28, %v1949_v5 }
 0x317   : > { %v1005_v31 = vmul.f32 %v2004_v7, %v982_v3 }
 0x318   : > { %v1650_v32 = vpop.eup %1649  ;;  %1551 = vmatprep.mubr.msk.f32.mxu0 %vm776_vm2, %v1024_v53  ;;  %v1002_v54 = vmul.f32 %v2004_v7, %v979_v2 }
 0x319   : > { %v1028_v33 = vadd.f32 %v2012_v18, %v1005_v31  ;;  %v984_v12 = vmul.f32 %v1650_v32, %v1978_v26 }
 0x31a   : > { %v1025_v14 = vadd.f32 %v2012_v18, %v1002_v54 }
 0x31b   : > { %1557 = vmatprep.mubr.msk.f32.mxu1 %vm776_vm2, %v1028_v33  ;;  %v1007_v5 = vmul.f32 %v2004_v7, %v984_v12 }
 0x31c   : > { %v1652_v41 = vpop.eup %1651  ;;  %1552 = vmatmul.mubr.msk.f32.gmra.mrb[24].mxu0 %vm776_vm2, %v1025_v14  ;;  %1558 = vmatmul.mubr.msk.f32.gmra.mrb[18].mxu1 %vm776_vm2, %v1029_v38 }
 0x31d   : > { %v1030_v42 = vadd.f32 %v2012_v18, %v1007_v5  ;;  %v985_v43 = vmul.f32 %v1652_v41, %v1991_v30 }
 0x31f   : > { %1560 = vmatprep.mubr.msk.f32.mxu1 %vm776_vm2, %v1030_v42  ;;  %v1008_v26 = vmul.f32 %v2004_v7, %v985_v43 }
 0x321   : > { %v1031_v56 = vadd.f32 %v2012_v18, %v1008_v26 }
 0x323   : > { %1561 = vmatmul.mubr.msk.f32.gmra.mrb[20].mxu1 %vm776_vm2, %v1031_v56 }
 0x3d4   : > { %v1541_v30 = vpop.f32.mrb[16].mxu0 }
 0x3d5   : > { %v1176_v7 = vadd.f32 %v1541_v30, %v1366_v44  ;;  %v1170_v18 = vpop.f32.mrb[17].mxu0 }
 0x3d6   : > { %v1171_v37 = vadd.f32 %v1366_v44, %v1170_v18 }
 0x3d7   : > { %1250 = vst [vmem:[%s2082_s10 + $0x8] sm:$0xff] %v1176_v7 }
 0x3d8   : > { %1249 = vst [vmem:[%s2082_s10] sm:$0xff] %v1171_v37  ;;  %v1544_v34 = vpop.f32.mrb[18].mxu0 }
 0x3d9   : > { %v1186_v47 = vadd.f32 %v1544_v34, %v1366_v44  ;;  %v1180_v48 = vpop.f32.mrb[19].mxu0 }
 0x3da   : > { %v1181_v49 = vadd.f32 %v1366_v44, %v1180_v48 }
 0x3db   : > { %1252 = vst [vmem:[%s2082_s10 + $0x18] sm:$0xff] %v1186_v47 }
 0x3dc   : > { %1251 = vst [vmem:[%s2082_s10 + $0x10] sm:$0xff] %v1181_v49 }
 0x3df   : > { %v1547_v50 = vpop.f32.mrb[20].mxu0 }
 0x3e0   : > { %v1196_v55 = vadd.f32 %v1547_v50, %v1366_v44  ;;  %v1190_v57 = vpop.f32.mrb[21].mxu0 }
 0x3e1   : > { %v1191_v58 = vadd.f32 %v1366_v44, %v1190_v57 }
 0x3e2   : > { %1254 = vst [vmem:[%s2082_s10 + $0x28] sm:$0xff] %v1196_v55 }
 0x3e3   : > { %1253 = vst [vmem:[%s2082_s10 + $0x20] sm:$0xff] %v1191_v58 }
 0x3e7   : > { %v1556_v13 = vpop.f32.mrb[16].mxu1 }
 0x3e8   : > { %v1550_v59 = vpop.f32.mrb[22].mxu0  ;;  %v1226_v60 = vadd.f32 %v1556_v13, %v1366_v44  ;;  %v1220_v40 = vpop.f32.mrb[17].mxu1 }
 0x3e9   : > { %v1206_v62 = vadd.f32 %v1550_v59, %v1366_v44  ;;  %v1200_v63 = vpop.f32.mrb[23].mxu0  ;;  %v1221_v39 = vadd.f32 %v1366_v44, %v1220_v40 }
 0x3ea   : > { %1260 = vst [vmem:[%s2082_s10 + $0x58] sm:$0xff] %v1226_v60  ;;  %v1201_v0 = vadd.f32 %v1366_v44, %v1200_v63 }
 0x3eb   : > { %1256 = vst [vmem:[%s2082_s10 + $0x38] sm:$0xff] %v1206_v62  ;;  %1259 = vst [vmem:[%s2082_s10 + $0x50] sm:$0xff] %v1221_v39 }
 0x3ec   : > { %1255 = vst [vmem:[%s2082_s10 + $0x30] sm:$0xff] %v1201_v0 }
 0x3ef   : > { %v1553_v1 = vpop.f32.mrb[24].mxu0  ;;  %v1559_v20 = vpop.f32.mrb[18].mxu1 }
 0x3f0   : > { %v1216_v6 = vadd.f32 %v1553_v1, %v1366_v44  ;;  %v1210_v8 = vpop.f32.mrb[25].mxu0  ;;  %v1236_v9 = vadd.f32 %v1559_v20, %v1366_v44  ;;  %v1230_v46 = vpop.f32.mrb[19].mxu1 }
 0x3f1   : > { %v1211_v10 = vadd.f32 %v1366_v44, %v1210_v8  ;;  %v1231_v35 = vadd.f32 %v1366_v44, %v1230_v46 }
 0x3f2   : > { %1258 = vst [vmem:[%s2082_s10 + $0x48] sm:$0xff] %v1216_v6  ;;  %1262 = vst [vmem:[%s2082_s10 + $0x68] sm:$0xff] %v1236_v9 }
 0x3f3   : > { %1257 = vst [vmem:[%s2082_s10 + $0x40] sm:$0xff] %v1211_v10  ;;  %1261 = vst [vmem:[%s2082_s10 + $0x60] sm:$0xff] %v1231_v35 }
 0x3f6   : > { %v1562_v45 = vpop.f32.mrb[20].mxu1 }
 0x3f7   : > { %v1246_v11 = vadd.f32 %v1562_v45, %v1366_v44  ;;  %v1240_v15 = vpop.f32.mrb[21].mxu1 }
 0x3f8   : > { %v1241_v16 = vadd.f32 %v1366_v44, %v1240_v15 }
 0x3f9   : > { %1264 = vst [vmem:[%s2082_s10 + $0x78] sm:$0xff] %v1246_v11 }
 0x3fa   : > { %1263 = vst [vmem:[%s2082_s10 + $0x70] sm:$0xff] %v1241_v16 }
 0x3fb PF: > { %s19_s30 = sadd.s32 1, %s1659_s30  }
 0x3fc   : > { %p16_p4 = scmp.ge.s32.totalorder %s19_s30, 4  }
 0x3fe   :  { %18 = sbr.rel (!%p16_p4) target bundleno = 1 (0x1), region = 86 }

</bundles_post_ra>
